<compile_context>
chip_gen: v5e
topology: v5e:2x2
jax: 0.10.0
libtpu: 0.0.40
codegen_flags: <defaults>
</compile_context>

<pallas_src>
import functools

import jax
import jax.numpy as jnp
from jax import lax
from jax.experimental import pallas as pl
from jax.experimental.pallas import tpu as pltpu

BN_EPS = 1e-5


def _pair(v):
    return (v, v) if isinstance(v, int) else tuple(v)


def _round_up(x, m):
    return -(-x // m) * m


# ---------------------------------------------------------------------------
# Kernel 1: fused ReLU -> (im2col) Conv matmul + bias, with per-tile BN partials
#   p_ref:   (1, K, TS)   bf16 im2col patches (spatial on lanes)
#   w_ref:   (Cout, K)    bf16 reshaped conv weight
#   b_ref:   (Cout, 1)    f32  conv bias
#   y_ref:   (1, Cout, TS) f32 pre-BN conv output
#   sum_ref/ssq_ref: (1, 1, Cout, 1) f32 per-tile partial sum / sum-of-squares
# ---------------------------------------------------------------------------
def _relu_conv_stats_kernel(p_ref, w_ref, b_ref, y_ref, sum_ref, ssq_ref, *,
                            s_real, ts):
    t = pl.program_id(1)
    x = jnp.maximum(p_ref[0], 0)                                   # ReLU (bf16)
    y = jnp.dot(w_ref[...], x, preferred_element_type=jnp.float32)  # (Cout, TS) f32
    y = y + b_ref[...]                                             # conv bias
    y_ref[0] = y
    # Mask spatial-padding columns so BN statistics cover exactly Ho*Wo pixels.
    col = t * ts + lax.broadcasted_iota(jnp.int32, (1, ts), 1)
    ym = jnp.where(col < s_real, y, 0.0)
    sum_ref[0, 0] = jnp.sum(ym, axis=1, keepdims=True)
    ssq_ref[0, 0] = jnp.sum(ym * ym, axis=1, keepdims=True)


# ---------------------------------------------------------------------------
# Kernel 2: BatchNorm apply (per-channel scale/shift), lane-dense over spatial.
# ---------------------------------------------------------------------------
def _bn_apply_kernel(y_ref, scale_ref, shift_ref, o_ref):
    o_ref[0] = y_ref[0] * scale_ref[...] + shift_ref[...]


# ---------------------------------------------------------------------------
# Wrapper: ReLUConvBN forward. x: (N, Cin, H, W) NCHW; weight: (Cout, Cin, kh, kw).
# ---------------------------------------------------------------------------
def relu_conv_bn(x, weight, bias, gamma, beta, *, stride=1, padding=0, dilation=1):
    n, cin, h, wd = x.shape
    cout, cin_w, kh, kw = weight.shape
    assert cin_w == cin
    sh, sw = _pair(stride)
    ph, pw = _pair(padding)
    dh, dw = _pair(dilation)
    ho = (h + 2 * ph - dh * (kh - 1) - 1) // sh + 1
    wo = (wd + 2 * pw - dw * (kw - 1) - 1) // sw + 1
    s = ho * wo
    k = kh * kw * cin

    # ---- glue: im2col into (N, K, S), K ordered as ((i*kw + j)*Cin + c), bf16 ----
    xb = x.astype(jnp.bfloat16)
    xp = jnp.pad(xb, ((0, 0), (0, 0), (ph, ph), (pw, pw)))
    cols = []
    for i in range(kh):
        for j in range(kw):
            hi, wi = i * dh, j * dw
            sl = xp[:, :, hi:hi + sh * (ho - 1) + 1:sh, wi:wi + sw * (wo - 1) + 1:sw]
            cols.append(sl.reshape(n, cin, s))
    patches = jnp.stack(cols, axis=1).reshape(n, k, s)

    # Lane-dense spatial tiling and small zero-pads (K to sublane multiple,
    # S to a multiple of the 128-aligned tile). Zero rows/cols contribute 0.
    ts = min(1024, _round_up(s, 128))
    s_pad = _round_up(s, ts)
    nt = s_pad // ts
    k_pad = _round_up(k, 8)
    patches = jnp.pad(patches, ((0, 0), (0, k_pad - k), (0, s_pad - s)))

    w_t = weight.transpose(0, 2, 3, 1).reshape(cout, k).astype(jnp.float32)
    w_t = jnp.pad(w_t, ((0, 0), (0, k_pad - k))).astype(jnp.bfloat16)
    b_col = bias.reshape(cout, 1).astype(jnp.float32)

    cparams = pltpu.CompilerParams(
        dimension_semantics=("parallel", "parallel"),
        vmem_limit_bytes=32 * 1024 * 1024,
    )

    y, psum, pssq = pl.pallas_call(
        functools.partial(_relu_conv_stats_kernel, s_real=s, ts=ts),
        grid=(n, nt),
        in_specs=[
            pl.BlockSpec((1, k_pad, ts), lambda b, t: (b, 0, t)),
            pl.BlockSpec((cout, k_pad), lambda b, t: (0, 0)),
            pl.BlockSpec((cout, 1), lambda b, t: (0, 0)),
        ],
        out_specs=[
            pl.BlockSpec((1, cout, ts), lambda b, t: (b, 0, t)),
            pl.BlockSpec((1, 1, cout, 1), lambda b, t: (b, t, 0, 0)),
            pl.BlockSpec((1, 1, cout, 1), lambda b, t: (b, t, 0, 0)),
        ],
        out_shape=[
            jax.ShapeDtypeStruct((n, cout, s_pad), jnp.float32),
            jax.ShapeDtypeStruct((n, nt, cout, 1), jnp.float32),
            jax.ShapeDtypeStruct((n, nt, cout, 1), jnp.float32),
        ],
        compiler_params=cparams,
    )(patches, w_t, b_col)

    # ---- tiny host-side reduction of per-tile partials -> per-channel scale/shift
    m_total = float(n * s)
    sum_y = jnp.sum(psum, axis=(0, 1))                 # (Cout, 1)
    sum_y2 = jnp.sum(pssq, axis=(0, 1))                # (Cout, 1)
    mean = sum_y / m_total
    var = sum_y2 / m_total - mean * mean               # biased batch variance
    scale = gamma.reshape(cout, 1).astype(jnp.float32) * lax.rsqrt(var + BN_EPS)
    shift = beta.reshape(cout, 1).astype(jnp.float32) - mean * scale

    out_cs = pl.pallas_call(
        _bn_apply_kernel,
        grid=(n, nt),
        in_specs=[
            pl.BlockSpec((1, cout, ts), lambda b, t: (b, 0, t)),
            pl.BlockSpec((cout, 1), lambda b, t: (0, 0)),
            pl.BlockSpec((cout, 1), lambda b, t: (0, 0)),
        ],
        out_specs=pl.BlockSpec((1, cout, ts), lambda b, t: (b, 0, t)),
        out_shape=jax.ShapeDtypeStruct((n, cout, s_pad), jnp.float32),
        compiler_params=cparams,
    )(y, scale, shift)

    # (N, Cout, S) is already NCHW order -> contiguous reshape (plus pad slice).
    return out_cs[:, :, :s].reshape(n, cout, ho, wo)


# ---------------------------------------------------------------------------
# Pure-JAX reference (PyTorch semantics) for verification.
# ---------------------------------------------------------------------------
def reference_forward(x, weight, bias, gamma, beta, *, stride=1, padding=0,
                      dilation=1, cast_bf16=False):
    xf = x.astype(jnp.float32)
    wf = weight.astype(jnp.float32)
    if cast_bf16:  # mirror the kernel's bf16 matmul inputs (f32 accumulation)
        xf = xf.astype(jnp.bfloat16).astype(jnp.float32)
        wf = wf.astype(jnp.bfloat16).astype(jnp.float32)
    sh, sw = _pair(stride)
    ph, pw = _pair(padding)
    dh, dw = _pair(dilation)
    xr = jnp.maximum(xf, 0.0)
    y = lax.conv_general_dilated(
        xr, wf, window_strides=(sh, sw), padding=[(ph, ph), (pw, pw)],
        rhs_dilation=(dh, dw), dimension_numbers=("NCHW", "OIHW", "NCHW"))
    y = y + bias.astype(jnp.float32)[None, :, None, None]
    mean = jnp.mean(y, axis=(0, 2, 3), keepdims=True)
    var = jnp.mean((y - mean) ** 2, axis=(0, 2, 3), keepdims=True)
    return (gamma[None, :, None, None] * (y - mean) * lax.rsqrt(var + BN_EPS)
            + beta[None, :, None, None])


if __name__ == "__main__":
    key = jax.random.PRNGKey(0)
    kx, kw1, kb1, kw2, kb2, kw3, kb3 = jax.random.split(key, 7)

    N, Cin, H, W = 2, 4, 16, 16
    x = jax.random.normal(kx, (N, Cin, H, W), jnp.float32)

    configs = [
        # name,        Cout, k, stride, pad, dil, expected shape, (kw, kb)
        ("3x3_s1_p1", 8, 3, 1, 1, 1, (2, 8, 16, 16), (kw1, kb1)),
        ("3x3_s2_p1", 16, 3, 2, 1, 1, (2, 16, 8, 8), (kw2, kb2)),
        ("1x1_s1_p0", 8, 1, 1, 0, 1, (2, 8, 16, 16), (kw3, kb3)),
    ]

    outputs = []
    for name, cout, kk, st, pd, dl, exp_shape, (kw_, kb_) in configs:
        w = 0.1 * jax.random.normal(kw_, (cout, Cin, kk, kk), jnp.float32)
        b = 0.1 * jax.random.normal(kb_, (cout,), jnp.float32)
        gamma = jnp.ones((cout,), jnp.float32)   # BatchNorm2d weight init
        beta = jnp.zeros((cout,), jnp.float32)   # BatchNorm2d bias init

        out = relu_conv_bn(x, w, b, gamma, beta, stride=st, padding=pd, dilation=dl)
        outputs.append(out)
        assert out.shape == exp_shape, (name, out.shape)

        ref_bf = reference_forward(x, w, b, gamma, beta, stride=st, padding=pd,
                                   dilation=dl, cast_bf16=True)
        ref_f32 = reference_forward(x, w, b, gamma, beta, stride=st, padding=pd,
                                    dilation=dl)
        assert bool(jnp.allclose(out, ref_bf, atol=2e-3, rtol=2e-3)), \
            f"{name}: mismatch vs bf16-input reference"
        assert bool(jnp.allclose(out, ref_f32, atol=3e-2, rtol=3e-2)), \
            f"{name}: mismatch vs f32 reference"

    jax.block_until_ready(outputs)
    print("KERNEL_OK")
</pallas_src>

<mosaic_0001>
module attributes {stable_mosaic.version = 11 : i64} {
  func.func @_relu_conv_stats_kernel(%arg0: i32, %arg1: i32, %arg2: memref<1x40x256xbf16, #tpu.memory_space<vmem>>, %arg3: memref<8x40xbf16, #tpu.memory_space<vmem>>, %arg4: memref<8x1xf32, #tpu.memory_space<vmem>>, %arg5: memref<1x8x256xf32, #tpu.memory_space<vmem>>, %arg6: memref<1x1x8x1xf32, #tpu.memory_space<vmem>>, %arg7: memref<1x1x8x1xf32, #tpu.memory_space<vmem>>) attributes {dimension_semantics = [#tpu.dimension_semantics<parallel>, #tpu.dimension_semantics<parallel>], iteration_bounds = array<i64: 2, 1>, scalar_prefetch = 0 : i64, scratch_operands = 0 : i64, tpu.core_type = #tpu.core_type<tc>, window_params = [{transform_indices = @transform_0, window_bounds = array<i64: 1, 40, 256>}, {pipeline_mode = #tpu.pipeline_mode<synchronous>, transform_indices = @transform_1, window_bounds = array<i64: 8, 40>}, {pipeline_mode = #tpu.pipeline_mode<synchronous>, transform_indices = @transform_2, window_bounds = array<i64: 8, 1>}, {transform_indices = @transform_3, window_bounds = array<i64: 1, 8, 256>}, {transform_indices = @transform_4, window_bounds = array<i64: 1, 1, 8, 1>}, {transform_indices = @transform_5, window_bounds = array<i64: 1, 1, 8, 1>}]} {
    %c0 = arith.constant 0 : index
    %c0_0 = arith.constant 0 : index
    %c0_1 = arith.constant 0 : index
    %0 = vector.load %arg2[%c0, %c0_0, %c0_1] : memref<1x40x256xbf16, #tpu.memory_space<vmem>>, vector<1x40x256xbf16>
    %1 = vector.shape_cast %0 : vector<1x40x256xbf16> to vector<40x256xbf16>
    %cst = arith.constant 0.000000e+00 : bf16
    %2 = vector.broadcast %cst : bf16 to vector<40x256xbf16>
    %3 = arith.maximumf %1, %2 : vector<40x256xbf16>
    %c0_2 = arith.constant 0 : index
    %c0_3 = arith.constant 0 : index
    %4 = vector.load %arg3[%c0_2, %c0_3] : memref<8x40xbf16, #tpu.memory_space<vmem>>, vector<8x40xbf16>
    %cst_4 = arith.constant dense<0.000000e+00> : vector<8x256xf32>
    %5 = tpu.matmul %4, %3, %cst_4 {dimension_numbers = #tpu.dot_dimension_numbers<[1], [0], [0], [1], [0, 0, 1, 1], [], []>} : vector<8x40xbf16>, vector<40x256xbf16>, vector<8x256xf32> -> vector<8x256xf32>
    %c0_5 = arith.constant 0 : index
    %c0_6 = arith.constant 0 : index
    %6 = vector.load %arg4[%c0_5, %c0_6] : memref<8x1xf32, #tpu.memory_space<vmem>>, vector<8x1xf32>
    %7 = vector.broadcast %6 : vector<8x1xf32> to vector<8x256xf32>
    %8 = arith.addf %5, %7 : vector<8x256xf32>
    %c0_7 = arith.constant 0 : index
    %c0_8 = arith.constant 0 : index
    %c0_9 = arith.constant 0 : index
    %9 = vector.load %arg5[%c0_7, %c0_8, %c0_9] : memref<1x8x256xf32, #tpu.memory_space<vmem>>, vector<1x8x256xf32>
    %10 = vector.shape_cast %9 : vector<1x8x256xf32> to vector<8x256xf32>
    %11 = vector.shape_cast %8 : vector<8x256xf32> to vector<1x8x256xf32>
    tpu.vector_store %arg5[%c0_7, %c0_8, %c0_9], %11 {strides = array<i32>} : memref<1x8x256xf32, #tpu.memory_space<vmem>>, vector<1x8x256xf32>,
    %c256_i32 = arith.constant 256 : i32
    %12 = arith.muli %arg1, %c256_i32 : i32
    %13 = tpu.iota {dimensions = array<i32: 1>} : vector<1x256xi32>
    %14 = vector.broadcast %12 : i32 to vector<1x256xi32>
    %15 = arith.addi %14, %13 : vector<1x256xi32>
    %c256_i32_10 = arith.constant 256 : i32
    %16 = vector.broadcast %c256_i32_10 : i32 to vector<1x256xi32>
    %17 = arith.cmpi slt, %15, %16 : vector<1x256xi32>
    %cst_11 = arith.constant 0.000000e+00 : f32
    %18 = vector.shape_cast %17 : vector<1x256xi1> to vector<1x256xi1>
    %19 = vector.broadcast %18 : vector<1x256xi1> to vector<8x256xi1>
    %20 = vector.broadcast %cst_11 : f32 to vector<8x256xf32>
    %21 = arith.select %19, %8, %20 : vector<8x256xi1>, vector<8x256xf32>
    %cst_12 = arith.constant dense<0.000000e+00> : vector<8xf32>
    %22 = vector.multi_reduction <add>, %21, %cst_12 [1] : vector<8x256xf32> to vector<8xf32>
    %23 = vector.shape_cast %22 : vector<8xf32> to vector<8x1xf32>
    %c0_13 = arith.constant 0 : index
    %c0_14 = arith.constant 0 : index
    %c0_15 = arith.constant 0 : index
    %c0_16 = arith.constant 0 : index
    %24 = vector.load %arg6[%c0_13, %c0_14, %c0_15, %c0_16] : memref<1x1x8x1xf32, #tpu.memory_space<vmem>>, vector<1x1x8x1xf32>
    %25 = vector.shape_cast %24 : vector<1x1x8x1xf32> to vector<8x1xf32>
    %26 = vector.shape_cast %23 : vector<8x1xf32> to vector<1x1x8x1xf32>
    tpu.vector_store %arg6[%c0_13, %c0_14, %c0_15, %c0_16], %26 {strides = array<i32>} : memref<1x1x8x1xf32, #tpu.memory_space<vmem>>, vector<1x1x8x1xf32>,
    %27 = arith.mulf %21, %21 : vector<8x256xf32>
    %cst_17 = arith.constant dense<0.000000e+00> : vector<8xf32>
    %28 = vector.multi_reduction <add>, %27, %cst_17 [1] : vector<8x256xf32> to vector<8xf32>
    %29 = vector.shape_cast %28 : vector<8xf32> to vector<8x1xf32>
    %c0_18 = arith.constant 0 : index
    %c0_19 = arith.constant 0 : index
    %c0_20 = arith.constant 0 : index
    %c0_21 = arith.constant 0 : index
    %30 = vector.load %arg7[%c0_18, %c0_19, %c0_20, %c0_21] : memref<1x1x8x1xf32, #tpu.memory_space<vmem>>, vector<1x1x8x1xf32>
    %31 = vector.shape_cast %30 : vector<1x1x8x1xf32> to vector<8x1xf32>
    %32 = vector.shape_cast %29 : vector<8x1xf32> to vector<1x1x8x1xf32>
    tpu.vector_store %arg7[%c0_18, %c0_19, %c0_20, %c0_21], %32 {strides = array<i32>} : memref<1x1x8x1xf32, #tpu.memory_space<vmem>>, vector<1x1x8x1xf32>,
    return
  }
  func.func @transform_0(%arg0: i32, %arg1: i32) -> (i32, i32, i32) {
    %c0_i32 = arith.constant 0 : i32
    %c0_i32_0 = arith.constant 0 : i32
    return %arg0, %c0_i32, %arg1 : i32, i32, i32
  }
  func.func @transform_1(%arg0: i32, %arg1: i32) -> (i32, i32) {
    %c0_i32 = arith.constant 0 : i32
    %c0_i32_0 = arith.constant 0 : i32
    %c0_i32_1 = arith.constant 0 : i32
    return %c0_i32, %c0_i32_0 : i32, i32
  }
  func.func @transform_2(%arg0: i32, %arg1: i32) -> (i32, i32) {
    %c0_i32 = arith.constant 0 : i32
    %c0_i32_0 = arith.constant 0 : i32
    %c0_i32_1 = arith.constant 0 : i32
    return %c0_i32, %c0_i32_0 : i32, i32
  }
  func.func @transform_3(%arg0: i32, %arg1: i32) -> (i32, i32, i32) {
    %c0_i32 = arith.constant 0 : i32
    %c0_i32_0 = arith.constant 0 : i32
    return %arg0, %c0_i32, %arg1 : i32, i32, i32
  }
  func.func @transform_4(%arg0: i32, %arg1: i32) -> (i32, i32, i32, i32) {
    %c0_i32 = arith.constant 0 : i32
    %c0_i32_0 = arith.constant 0 : i32
    %c0_i32_1 = arith.constant 0 : i32
    return %arg0, %arg1, %c0_i32, %c0_i32_0 : i32, i32, i32, i32
  }
  func.func @transform_5(%arg0: i32, %arg1: i32) -> (i32, i32, i32, i32) {
    %c0_i32 = arith.constant 0 : i32
    %c0_i32_0 = arith.constant 0 : i32
    %c0_i32_1 = arith.constant 0 : i32
    return %arg0, %arg1, %c0_i32, %c0_i32_0 : i32, i32, i32, i32
  }
}

</mosaic_0001>

<bundles_post_ra>
// kernel: tpu_custom_call.1
= control target key start
LH: loop header
LB: loop body
LE: loop exit
PB: predicated region body
PF: predicated region fallthrough
CT: control target
= control target key end

     0   :  { %11 = vsyncpa [#allocation3], 0  ;;  %s961_s0 = inlined_call_operand.hbm [shape: bf16[2,40,256], index: 0, kind: input, shape index: {}]   ;;  %s962_s1 = inlined_call_operand.vmem [shape: bf16[8,40], index: 1, kind: input, shape index: {}]   ;;  %s963_s2 = inlined_call_operand.vmem [shape: f32[8,1], index: 2, kind: input, shape index: {}]   ;;  %s964_s3 = inlined_call_operand.hbm [shape: f32[2,8,256], index: 3, kind: output, shape index: {0}]   ;;  %s965_s4 = inlined_call_operand.vmem [shape: f32[2,1,8,1], index: 4, kind: output, shape index: {1}]   ;;  %s966_s5 = inlined_call_operand.vmem [shape: f32[2,1,8,1], index: 5, kind: output, shape index: {2}]  }
   0x1   :  { %13 = vsyncpa [#allocation3 + $0x1], 0 }
   0x2   :  { %14 = vsyncpa [#allocation4], 0 }
   0x3   :  { %16 = vsyncpa [#allocation4 + $0x1], 0  ;;  %s824_s18 = smov 0   ;;  %s826_s19 = smov 0  }
   0x4   :  { %s828_s20 = smov 0   ;;  %s830_s21 = smov 0  }
   0x5   :  { %s832_s22 = smov 0   ;;  %s834_s23 = smov 0  }
   0x6 LB: > { %s591_s24 = sadd.s32 4294967295, %s789_s23   ;;  %s592_s25 = sadd.s32 4294967294, %s789_s23   ;;  %s789_s23 = sphi %s834_s23, %s22_s23   ;;  %s785_s22 = sphi %s832_s22, %s975_s22   ;;  %s781_s21 = sphi %s830_s21, %s974_s21   ;;  %s777_s20 = sphi %s828_s20, %s973_s20   ;;  %s773_s19 = sphi %s826_s19, %s972_s19   ;;  %s769_s18 = sphi %s824_s18, %s971_s18  }
   0x7   : > { %s34_s26 = sadd.s32 1, %s785_s22  ;;  %s43_s27 = sadd.s32 1, %s777_s20 }
   0x8   : > { %p36_p0 = scmp.ge.s32.totalorder %s34_s26, 2  ;;  %p50_p1 = scmp.ne.s32.totalorder %s777_s20, %s773_s19 }
   0x9   : > { %p51_p2 = scmp.eq.s32.totalorder %s789_s23, 0  ;;  %p56_p3 = scmp.ne.s32.totalorder %s773_s19, %s769_s18 }
   0xa   : > { %s977_s26 = smov (%p36_p0, %s34_s26), 0  ;;  %p57_p5 = scmp.eq.s32.totalorder %s591_s24, 0 }
   0xb   : > { %p865_p4 = por %p51_p2, %p50_p1  ;;  %s38_s29 = ssub.s32 %s785_s22, %s977_s26 }
   0xc   : > { %p124_p6 = scmp.eq.s32.totalorder %s591_s24, 1  ;;  %p41_p7 = scmp.eq.s32.totalorder %s38_s29, 0 }
   0xd   : > { %p871_p8 = por %p57_p5, %p56_p3  ;;  %p130_p10 = scmp.eq.s32.totalorder %s592_s25, 1 }
   0xe   : > { %p875_p9 = por %p124_p6, %p50_p1  ;;  %p594_p12 = scmp.ge.s32.totalorder %s789_s23, 2 }
   0xf   : > { %s880_s7 = scalar_select %p41_p7, %s777_s20, %s43_s27  }
  0x10   : > { %p882_p11 = por %p130_p10, %p56_p3  ;;  %p623_p13 = scmp.lt.s32.totalorder %s789_s23, 2 }
  0x11   : > { %s212_s9 = sand.u32 1, %s777_s20   ;;  %s609_s11 = smul.u32 40, %s785_s22 }
  0x12   : > { %s608_s10 = smul.u32 40, %s212_s9  ;;  %p616_p0 = pnand %p623_p13, %p865_p4 }
  0x13   : > { %s223_s14 = scalar_lea.hbm %s961_s0, %s609_s11  ;;  %p596_p1 = scmp.ge.s32.totalorder %s789_s23, 1 }
  0x14   : > { %s216_s15 = scalar_lea.vmem [#allocation2], %s608_s10  ;;  %s224_s17 = sshll.u32 %s223_s14, 4  ;;  %s225_s17 = int_to_ptr.hbm [resolvable:$true] %s224_s17 }
  0x15   : > { %s226_s16 = sshll.u32 %s216_s15, 4  ;;  %s213_s24 = scalar_lea.sflag [#allocation3], %s212_s9  ;;  %s227_s16 = int_to_ptr.vmem [resolvable:$true] %s226_s16 }
  0x16   : > { %s791_s25 = smov 128   ;;  %s792_s27 = smov 8  }
  0x17   : > { %618 = dma.hbm_to_vmem [thread:$0]  (!%p616_p0), %s225_s17, 640, %s227_s16, %s213_s24, %s791_s25, %s791_s25, %s792_s27  }
  0x18   : > { %p234_p2 = scmp.lt.s32.totalorder %s789_s23, 3 }
  0x1a   : > { %p235_p3 = pnand %p596_p1, %p234_p2 }
  0x1b   : > { %s898_s28 = sand.u32 (!%p235_p3), 1, %s773_s19  }
  0x1c   : > { %238 = sbr.rel (%p235_p3) target bundleno = 302 (0x12e), region = 32  ;;  %s241_s10 = scalar_lea.sflag (!%p235_p3), [#allocation3], %s898_s28 }
  0x1d   : > { %s610_s29 = smul.u32 (!%p235_p3), 40, %s898_s28 }
  0x1f   : > { %s244_s11 = scalar_lea.vmem (!%p235_p3), [#allocation2], %s610_s29 }
  0x21   : > { %760 = dma.done.wait (%p871_p8), %s241_s10, 640  }
  0x22   : > { %762 = vsyncadd (%p871_p8), %s241_s10, 4294966656  ;;  %v793_v0 = vmov 0   ;;  %v307_v1 = vld [vmem:[%s244_s11 + $0x20] sm:$0xff]  ;;  %v305_v2 = vld [vmem:[%s244_s11 + $0x10] sm:$0xff]  ;;  %vm345_vm0 = vcmask 1043456   ;;  %vm341_vm1 = vcmask 326656  }
  0x23   : > { %676 = vset.pattern.permute.xlu0 %v793_v0  ;;  %v306_v3 = vld [vmem:[%s244_s11 + $0x18] sm:$0xff]  ;;  %v316_v4 = vunpack.c.l.bf16 %v307_v1  ;;  %v317_v5 = vunpack.c.h.bf16 %v307_v1  ;;  %v312_v6 = vunpack.c.l.bf16 %v305_v2  ;;  %v303_v8 = vld [vmem:[%s244_s11] sm:$0xff]  ;;  %v304_v9 = vld [vmem:[%s244_s11 + $0x8] sm:$0xff]  ;;  %v313_v10 = vunpack.c.h.bf16 %v305_v2  ;;  %s607_s14 = sshll.u32 %s781_s21, 4  ;;  %s597_s15 = sshll.u32 %s898_s28, 4 }
  0x24   : > { %v314_v7 = vunpack.c.l.bf16 %v306_v3  ;;  %v315_v11 = vunpack.c.h.bf16 %v306_v3  ;;  %v335_v12 = vld [vmem:[%s963_s2] sm:$0xff]  ;;  %v308_v15 = vunpack.c.l.bf16 %v303_v8  ;;  %v310_v16 = vunpack.c.l.bf16 %v304_v9  ;;  %s434_s24 = scalar_lea.hbm %s964_s3, %s607_s14  ;;  %s267_s25 = scalar_lea.vmem [#allocation5], %s597_s15 }
  0x25   : > { %v326_v13 = vmax.f32 %v316_v4, 0.0  ;;  %v327_v14 = vmax.f32 %v317_v5, 0.0  ;;  %338 = vperm.xlu0 %676, %v335_v12   ;;  %v322_v17 = vmax.f32 %v312_v6, 0.0  ;;  %v323_v19 = vmax.f32 %v313_v10, 0.0  ;;  %v334_v35 = vld [vmem:[%s962_s1] sm:$0xf] }
  0x26   : > { %v324_v18 = vmax.f32 %v314_v7, 0.0  ;;  %v325_v20 = vmax.f32 %v315_v11, 0.0  ;;  %v309_v23 = vunpack.c.h.bf16 %v303_v8  ;;  %v311_v24 = vunpack.c.h.bf16 %v304_v9  ;;  %s436_s27 = sshll.u32 %s267_s25, 4  ;;  %s438_s29 = sshll.u32 %s434_s24, 4  ;;  %s437_s27 = int_to_ptr.vmem [resolvable:$true] %s436_s27  ;;  %s439_s29 = int_to_ptr.hbm [resolvable:$true] %s438_s29 }
  0x27   : > { %v332_v21 = vpack.c.bf16 %v326_v13, %v326_v13  ;;  %v333_v22 = vpack.c.bf16 %v327_v14, %v327_v14  ;;  %v318_v27 = vmax.f32 %v308_v15, 0.0  ;;  %v320_v28 = vmax.f32 %v310_v16, 0.0  ;;  %s407_s10 = scalar_lea.sflag [#allocation4], %s898_s28  ;;  %s721_s11 = sshra.s32 %s439_s29, 4  ;;  %s722_s11 = int_to_ptr.hbm [resolvable:$true] %s721_s11 }
  0x28   : > { %v330_v29 = vpack.c.bf16 %v324_v18, %v322_v17  ;;  %v331_v30 = vpack.c.bf16 %v325_v20, %v323_v19  ;;  %v319_v31 = vmax.f32 %v309_v23, 0.0  ;;  %v321_v32 = vmax.f32 %v311_v24, 0.0  ;;  %s723_s9 = scalar_lea.hbm %s722_s11, 16  ;;  %s727_s13 = scalar_lea.hbm %s964_s3, 32 }
  0x29   : > { %v347_v25 = vsel %vm345_vm0, %v332_v21, 0  ;;  %v350_v26 = vsel %vm345_vm0, %v333_v22, 0  ;;  %v328_v33 = vpack.c.bf16 %v320_v28, %v318_v27  ;;  %p724_p4 = scmp.ne.s32.totalorder %s722_s11, %s723_s9  ;;  %p728_p7 = scmp.lt.s32.totalorder %s722_s11, %s964_s3 }
  0x2a   : > { %357 = vmatpush.bf16.msra.mxu0 %v347_v25  ;;  %370 = vmatpush.bf16.msra.mxu1 %v350_v26  ;;  %v329_v34 = vpack.c.bf16 %v321_v32, %v319_v31  ;;  %p729_p8 = scmp.lt.s32.totalorder %s727_s13, %s723_s9 }
  0x2b   : > { %p725_p5 = pnand %p724_p4, %p875_p9 }
  0x2c   : > { %p730_p10 = por %p729_p8, %p728_p7 }
  0x2d   : > { %p726_p6 = pneg %p725_p5 }
  0x2e   : > { %358 = vmatpush.bf16.msra.mxu0 %v330_v29  ;;  %371 = vmatpush.bf16.msra.mxu1 %v331_v30 }
  0x2f   : > { %p731_p13 = pnand %p730_p10, %p726_p6 }
  0x32   : > { %359 = vmatpush.bf16.msra.mxu0 %v328_v33  ;;  %372 = vmatpush.bf16.msra.mxu1 %v329_v34 }
  0x35   : > { %600 = vmatmul.msk.bf16.vlgmr.msra.gmra.mxu0 %vm341_vm1, %v334_v35  ;;  %601 = vmatmul.msk.bf16.vlgmr.msra.gmra.mxu1 %vm341_vm1, %v334_v35 }
  0x97   : > { %v339_v36 = vpop.permute.xlu0 %338 }
  0xb2   : > { %v361_v37 = vpop.f32.mrf.mxu0  ;;  %v374_v38 = vpop.f32.mrf.mxu1 }
  0xb3   : > { %v362_v39 = vadd.f32 %v361_v37, %v339_v36  ;;  %v375_v40 = vadd.f32 %v374_v38, %v339_v36 }
  0xb5   : > { %378 = vst [vmem:[%s267_s25] sm:$0xff] %v362_v39  ;;  %v395_v41 = vadd.f32 %v375_v40, %v362_v39  ;;  %v400_v42 = vmul.f32 %v362_v39, %v362_v39  ;;  %v401_v43 = vmul.f32 %v375_v40, %v375_v40 }
  0xb6   : > { %379 = vst [vmem:[%s267_s25 + $0x8] sm:$0xff] %v375_v40 }
  0xb7   : > { %396 = vadd.xlane.f32.xlu0 %v395_v41  ;;  %v402_v44 = vadd.f32 %v401_v43, %v400_v42 }
  0xb8   : > { %734 = shalt.err (!%p731_p13)
}
  0xb9   : > { %613 = dma.vmem_to_hbm [thread:$0]  (%p875_p9), %s437_s27, 256, %s439_s29, %s407_s10   ;;  %403 = vadd.xlane.f32.xlu1 %v402_v44  ;;  %vm398_vm2 = vcmask 7168  }
  0xba   : > { %v363_v45 = vpop.f32.mrf.mxu0  ;;  %v376_v46 = vpop.f32.mrf.mxu1  ;;  %p288_p0 = scmp.lt.s32.totalorder %s781_s21, 1 }
  0xbc   : > { %s979_s21 = smov (!%p288_p0, %s781_s21), 1 }
  0xbd   : > { %s598_s28 = sshll.u32 %s979_s21, 3 }
  0xbe   : > { %s294_s24 = scalar_lea.vmem %s965_s4, %s598_s28  ;;  %s301_s9 = scalar_lea.vmem %s966_s5, %s598_s28 }
 0x12a   : > { %v397_v47 = vpop.xlane.xlu0 %396 }
 0x12b   : > { %399 = vst.msk [vmem:[%s294_s24] sm:$0xff] %vm398_vm2, %v397_v47 }
 0x12c   : > { %v404_v48 = vpop.xlane.xlu1 %403 }
 0x12d   : > { %405 = vst.msk [vmem:[%s301_s9] sm:$0xff] %vm398_vm2, %v404_v48 }
 0x12e PF: > { %s456_s6 = sand.u32 1, %s769_s18   ;;  %p620_p9 = pnand %p594_p12, %p882_p11 }
 0x12f   : > { %s457_s21 = scalar_lea.sflag [#allocation4], %s456_s6 }
 0x130   : > { %p621_p1 = pneg %p620_p9 }
 0x132   : > { %764 = dma.done.wait (%p621_p1), %s457_s21, 256  }
 0x133   : > { %766 = vsyncadd (%p621_p1), %s457_s21, 4294967040  ;;  %s22_s23 = sadd.s32 1, %s789_s23   ;;  %s971_s18 = smov %s773_s19 }
 0x134   : > { %p19_p2 = scmp.ge.s32.totalorder %s22_s23, 4   ;;  %s972_s19 = smov %s777_s20 }
 0x135   : > { %s973_s20 = smov %s880_s7  ;;  %s974_s21 = smov %s785_s22 }
 0x136   : > { %s975_s22 = smov %s977_s26  ;;  %21 = sbr.rel (!%p19_p2) target bundleno = 6 (0x6), region = 101 }
 0x13b   :  { %483 = vsyncpa [#allocation3], 1 }
 0x13c   :  { %485 = vsyncpa [#allocation3 + $0x1], 1 }
 0x13d   :  { %486 = vsyncpa [#allocation4], 1 }
 0x13e   :  { %488 = vsyncpa [#allocation4 + $0x1], 1 }

</bundles_post_ra>
